<compile_context>
chip_gen: v7x
topology: tpu7x:2x2x1
jax: 0.10.0
libtpu: 0.0.40
codegen_flags: <defaults>
</compile_context>

<pallas_src>
import functools

import jax
import jax.numpy as jnp
from jax.experimental import pallas as pl
from jax.experimental.pallas import tpu as pltpu


# ----------------------------------------------------------------------------
# Helpers
# ----------------------------------------------------------------------------
def _round_up(x, m):
    return (x + m - 1) // m * m


def _vmem_budget_bytes():
    """Usable VMEM budget (bytes) with headroom; conservative fallback."""
    try:
        cap = int(pltpu.get_tpu_info().vmem_capacity_bytes)
    except Exception:
        cap = 64 * 1024 * 1024          # assume the smallest (v7x-like) VMEM
    return int(cap * 0.7)


# ----------------------------------------------------------------------------
# Pallas kernels for SelfGating
# ----------------------------------------------------------------------------
def _gate_resident_kernel(x_ref, w_ref, b_ref, o_ref, *, inv_s):
    """Single-pass variant: one whole (C, S_pad) sample resident in VMEM."""
    x = x_ref[0]                                                    # (C, S_pad), native dtype
    # f32-accumulated sum over the (zero-padded) spatiotemporal axis; divide by
    # the true S so padding does not bias the gate.
    mean = jnp.sum(x, axis=1, keepdims=True, dtype=jnp.float32) * inv_s   # (C, 1)
    g = jnp.dot(w_ref[...], mean, preferred_element_type=jnp.float32)     # (C, 1)
    g = jax.nn.sigmoid(g + b_ref[...])
    # Gate multiply in the native dtype (no f32 materialization of the tile).
    o_ref[0] = x * g.astype(x.dtype)


def _partial_sum_kernel(x_ref, sum_ref):
    """Two-pass variant, pass A: accumulate per-channel sums over S tiles."""
    @pl.when(pl.program_id(1) == 0)
    def _():
        sum_ref[...] = jnp.zeros_like(sum_ref)
    sum_ref[...] += jnp.sum(x_ref[...], axis=-1, keepdims=True,
                            dtype=jnp.float32)                      # (1, C, 1)


def _scale_kernel(g_ref, x_ref, o_ref):
    """Two-pass variant, pass B: pure streaming multiply on lane-dense tiles."""
    o_ref[...] = x_ref[...] * g_ref[...]                            # (1,C,T)*(1,C,1)


# ----------------------------------------------------------------------------
# SelfGating wrapper (dispatches single-pass vs. two-pass)
# ----------------------------------------------------------------------------
def self_gating(x, w, b, *, mode=None, tile_s=512):
    """S3D-G feature gating.  x: (N, C, T, H, W);  w: (C, C);  b: (C,)."""
    N, C, T, H, W = x.shape
    S = T * H * W
    dtype = x.dtype
    itemsize = jnp.dtype(dtype).itemsize

    s128 = _round_up(S, 128)            # lane-dense minimum padding

    # VMEM need of the single-pass variant: 2 input + 2 output buffers + fc.
    single_need = 4 * C * s128 * itemsize + 4 * C * C + (8 << 20)
    if mode is None:
        mode = "single" if single_need <= _vmem_budget_bytes() else "two"

    if mode == "single":
        # ---- single-pass: whole sample resident, x read from HBM once ----
        S_pad = s128
        x_flat = x.reshape(N, C, S)
        if S_pad != S:
            x_flat = jnp.pad(x_flat, ((0, 0), (0, 0), (0, S_pad - S)))
        w_f32 = w.astype(jnp.float32)                 # hoisted: cast once
        b_col = b.astype(jnp.float32).reshape(C, 1)   # hoisted: no in-kernel .T
        kernel = functools.partial(_gate_resident_kernel, inv_s=1.0 / S)
        out_flat = pl.pallas_call(
            kernel,
            out_shape=jax.ShapeDtypeStruct((N, C, S_pad), dtype),
            grid=(N,),
            in_specs=[
                pl.BlockSpec((1, C, S_pad), lambda n: (n, 0, 0)),
                pl.BlockSpec((C, C), lambda n: (0, 0)),
                pl.BlockSpec((C, 1), lambda n: (0, 0)),
            ],
            out_specs=pl.BlockSpec((1, C, S_pad), lambda n: (n, 0, 0)),
            compiler_params=pltpu.CompilerParams(
                dimension_semantics=("parallel",),
                vmem_limit_bytes=int(max(single_need, 32 << 20))),
        )(x_flat, w_f32, b_col)
        return out_flat[:, :, :S].reshape(N, C, T, H, W)

    # ---- two-pass streaming variant -------------------------------------
    tile = tile_s if s128 >= tile_s else s128          # multiple of 128
    S_pad = _round_up(S, tile)
    n_s = S_pad // tile
    x_flat = x.reshape(N, C, S)
    if S_pad != S:
        x_flat = jnp.pad(x_flat, ((0, 0), (0, 0), (0, S_pad - S)))

    # Pass A: per-(n, c) sums over S tiles (f32 accumulation, resident output).
    sums = pl.pallas_call(
        _partial_sum_kernel,
        out_shape=jax.ShapeDtypeStruct((N, C, 1), jnp.float32),
        grid=(N, n_s),
        in_specs=[pl.BlockSpec((1, C, tile), lambda n, s: (n, 0, s))],
        out_specs=pl.BlockSpec((1, C, 1), lambda n, s: (n, 0, 0)),
        compiler_params=pltpu.CompilerParams(
            dimension_semantics=("parallel", "arbitrary"),
            vmem_limit_bytes=int(max(2 * C * tile * itemsize + (8 << 20),
                                     32 << 20))),
    )(x_flat)

    # Gate for all N in one shot (tiny batched matmul; sanctioned as plain XLA).
    mean = sums[:, :, 0] * (1.0 / S)                                 # (N, C) f32
    gate = jax.nn.sigmoid(mean @ w.astype(jnp.float32).T + b.astype(jnp.float32))
    gate = gate.astype(dtype).reshape(N, C, 1)                       # pre-cast

    # Pass B: lane-dense streaming multiply; both grid axes parallel.
    out_flat = pl.pallas_call(
        _scale_kernel,
        out_shape=jax.ShapeDtypeStruct((N, C, S_pad), dtype),
        grid=(N, n_s),
        in_specs=[
            pl.BlockSpec((1, C, 1), lambda n, s: (n, 0, 0)),
            pl.BlockSpec((1, C, tile), lambda n, s: (n, 0, s)),
        ],
        out_specs=pl.BlockSpec((1, C, tile), lambda n, s: (n, 0, s)),
        compiler_params=pltpu.CompilerParams(
            dimension_semantics=("parallel", "parallel"),
            vmem_limit_bytes=int(max(4 * C * tile * itemsize + (8 << 20),
                                     32 << 20))),
    )(gate, x_flat)

    return out_flat[:, :, :S].reshape(N, C, T, H, W)


def self_gating_ref(x, w, b):
    avg = jnp.mean(x, axis=(2, 3, 4))
    gate = jax.nn.sigmoid(avg @ w.T + b)
    return gate[:, :, None, None, None] * x


# ----------------------------------------------------------------------------
# InceptionBlock3D glue.
# TODO(synk): the 3-D convolutions, BatchNorm3d (eval-mode), ReLU and MaxPool3d
# below are expressed with jax.lax / XLA ops rather than hand-written Pallas
# kernels; only the SelfGating modules run through Pallas.
# ----------------------------------------------------------------------------
_BN_EPS = 1e-5


def _conv3d(x, w, stride, padding):
    return jax.lax.conv_general_dilated(
        x, w, window_strides=stride, padding=[(p, p) for p in padding],
        dimension_numbers=("NCDHW", "OIDHW", "NCDHW"))


def _bn3d(x, p):
    inv = p["gamma"] * jax.lax.rsqrt(p["rv"] + _BN_EPS)
    shift = p["beta"] - p["rm"] * inv
    return x * inv[None, :, None, None, None] + shift[None, :, None, None, None]


def _base_conv3d(x, p):      # InceptionBaseConv3D: conv -> bn -> relu
    return jax.nn.relu(_bn3d(_conv3d(x, p["w"], p["stride"], p["pad"]), p["bn"]))


def _st_conv3d(x, p):        # STConv3d: (1,k,k) conv->bn->relu, (k,1,1) conv->bn->relu
    y = jax.nn.relu(_bn3d(_conv3d(x, p["w1"], p["stride1"], p["pad1"]), p["bn1"]))
    y = jax.nn.relu(_bn3d(_conv3d(y, p["w2"], p["stride2"], p["pad2"]), p["bn2"]))
    return y


def _maxpool3d_3x3x3_s1_p1(x):
    return jax.lax.reduce_window(
        x, -jnp.inf, jax.lax.max,
        window_dimensions=(1, 1, 3, 3, 3), window_strides=(1, 1, 1, 1, 1),
        padding=((0, 0), (0, 0), (1, 1), (1, 1), (1, 1)))


def inception_block3d(x, params, gating_fn=self_gating):
    x0 = _base_conv3d(x, params["b0"])
    x1 = _st_conv3d(_base_conv3d(x, params["b1a"]), params["b1b"])
    x2 = _st_conv3d(_base_conv3d(x, params["b2a"]), params["b2b"])
    x3 = _base_conv3d(_maxpool3d_3x3x3_s1_p1(x), params["b3"])
    if gating_fn is not None:
        x0 = gating_fn(x0, *params["g0"])
        x1 = gating_fn(x1, *params["g1"])
        x2 = gating_fn(x2, *params["g2"])
        x3 = gating_fn(x3, *params["g3"])
    return jnp.concatenate([x0, x1, x2, x3], axis=1)


def _bn_params(c):
    return dict(gamma=jnp.ones((c,), jnp.float32), beta=jnp.zeros((c,), jnp.float32),
                rm=jnp.zeros((c,), jnp.float32), rv=jnp.ones((c,), jnp.float32))


def init_inception_params(key, in_planes, out_planes):
    n0, n1a, n1b, n2a, n2b, n3b = out_planes
    ks = iter(jax.random.split(key, 16))

    def conv_w(k, shape):
        return 0.01 * jax.random.normal(k, shape, jnp.float32)

    def base(k, ci, co):
        return dict(w=conv_w(k, (co, ci, 1, 1, 1)), stride=(1, 1, 1),
                    pad=(0, 0, 0), bn=_bn_params(co))

    def st(k1, k2, ci, co, ksz=3, pad=1):
        return dict(w1=conv_w(k1, (co, ci, 1, ksz, ksz)), stride1=(1, 1, 1),
                    pad1=(0, pad, pad), bn1=_bn_params(co),
                    w2=conv_w(k2, (co, co, ksz, 1, 1)), stride2=(1, 1, 1),
                    pad2=(pad, 0, 0), bn2=_bn_params(co))

    def gate(k, c):
        kw, kb = jax.random.split(k)
        return (0.1 * jax.random.normal(kw, (c, c), jnp.float32),
                0.1 * jax.random.normal(kb, (c,), jnp.float32))

    return dict(
        b0=base(next(ks), in_planes, n0),
        b1a=base(next(ks), in_planes, n1a),
        b1b=st(next(ks), next(ks), n1a, n1b),
        b2a=base(next(ks), in_planes, n2a),
        b2b=st(next(ks), next(ks), n2a, n2b),
        b3=base(next(ks), in_planes, n3b),
        g0=gate(next(ks), n0), g1=gate(next(ks), n1b),
        g2=gate(next(ks), n2b), g3=gate(next(ks), n3b),
    )


# ----------------------------------------------------------------------------
# Self-test
# ----------------------------------------------------------------------------
if __name__ == "__main__":
    key = jax.random.PRNGKey(0)
    k_gate_x, k_w, k_b, k_pad_x, k_blk_x, k_params = jax.random.split(key, 6)

    # --- SelfGating kernel: both variants, S a multiple of 128 -------------
    N, C, T, H, W = 2, 16, 4, 8, 8                     # S = 256 (lane-dense)
    x = jax.random.normal(k_gate_x, (N, C, T, H, W), dtype=jnp.float32)
    fc_w = 0.1 * jax.random.normal(k_w, (C, C), dtype=jnp.float32)
    fc_b = 0.1 * jax.random.normal(k_b, (C,), dtype=jnp.float32)
    ref = self_gating_ref(x, fc_w, fc_b)
    for mode in ("single", "two"):
        out = jax.block_until_ready(self_gating(x, fc_w, fc_b, mode=mode))
        assert out.shape == x.shape
        assert jnp.allclose(out, ref, atol=1e-5, rtol=1e-5), (
            mode, float(jnp.max(jnp.abs(out - ref))))

    # --- SelfGating kernel: S not a multiple of 128 (exercises padding) ----
    xp = jax.random.normal(k_pad_x, (2, 8, 3, 5, 5), dtype=jnp.float32)   # S = 75
    wp = 0.1 * jax.random.normal(k_w, (8, 8), dtype=jnp.float32)
    bp = 0.1 * jax.random.normal(k_b, (8,), dtype=jnp.float32)
    refp = self_gating_ref(xp, wp, bp)
    for mode in ("single", "two"):
        outp = jax.block_until_ready(self_gating(xp, wp, bp, mode=mode))
        assert jnp.allclose(outp, refp, atol=1e-5, rtol=1e-5), (
            mode, float(jnp.max(jnp.abs(outp - refp))))

    # --- Full InceptionBlock3D forward (gating via the Pallas kernel) ------
    in_planes, out_planes = 16, [8, 8, 16, 8, 16, 8]
    xb = jax.random.normal(k_blk_x, (2, in_planes, 4, 8, 8), dtype=jnp.float32)
    params = init_inception_params(k_params, in_planes, out_planes)
    out_blk = jax.block_until_ready(
        inception_block3d(xb, params, gating_fn=self_gating))
    ref_blk = jax.block_until_ready(
        inception_block3d(xb, params, gating_fn=self_gating_ref))
    assert out_blk.shape == (2, 8 + 16 + 16 + 8, 4, 8, 8)
    assert jnp.allclose(out_blk, ref_blk, atol=1e-4, rtol=1e-4), (
        float(jnp.max(jnp.abs(out_blk - ref_blk))))

    print("KERNEL_OK")
</pallas_src>

<mosaic_0001>
module attributes {stable_mosaic.version = 11 : i64} {
  func.func @_gate_resident_kernel(%arg0: i32, %arg1: memref<1x16x256xf32, #tpu.memory_space<vmem>>, %arg2: memref<16x16xf32, #tpu.memory_space<vmem>>, %arg3: memref<16x1xf32, #tpu.memory_space<vmem>>, %arg4: memref<1x16x256xf32, #tpu.memory_space<vmem>>) attributes {dimension_semantics = [#tpu.dimension_semantics<parallel>], iteration_bounds = array<i64: 2>, scalar_prefetch = 0 : i64, scratch_operands = 0 : i64, tpu.core_type = #tpu.core_type<tc>, window_params = [{transform_indices = @transform_0, window_bounds = array<i64: 1, 16, 256>}, {pipeline_mode = #tpu.pipeline_mode<synchronous>, transform_indices = @transform_1, window_bounds = array<i64: 16, 16>}, {pipeline_mode = #tpu.pipeline_mode<synchronous>, transform_indices = @transform_2, window_bounds = array<i64: 16, 1>}, {transform_indices = @transform_3, window_bounds = array<i64: 1, 16, 256>}]} {
    %c0 = arith.constant 0 : index
    %c0_0 = arith.constant 0 : index
    %c0_1 = arith.constant 0 : index
    %0 = vector.load %arg1[%c0, %c0_0, %c0_1] : memref<1x16x256xf32, #tpu.memory_space<vmem>>, vector<1x16x256xf32>
    %1 = vector.shape_cast %0 : vector<1x16x256xf32> to vector<16x256xf32>
    %cst = arith.constant dense<0.000000e+00> : vector<16xf32>
    %2 = vector.multi_reduction <add>, %1, %cst [1] : vector<16x256xf32> to vector<16xf32>
    %3 = vector.shape_cast %2 : vector<16xf32> to vector<16x1xf32>
    %cst_2 = arith.constant 3.906250e-03 : f32
    %4 = vector.broadcast %cst_2 : f32 to vector<16x1xf32>
    %5 = arith.mulf %3, %4 : vector<16x1xf32>
    %c0_3 = arith.constant 0 : index
    %c0_4 = arith.constant 0 : index
    %6 = vector.load %arg2[%c0_3, %c0_4] : memref<16x16xf32, #tpu.memory_space<vmem>>, vector<16x16xf32>
    %cst_5 = arith.constant dense<0.000000e+00> : vector<16x1xf32>
    %7 = tpu.matmul %6, %5, %cst_5 {dimension_numbers = #tpu.dot_dimension_numbers<[1], [0], [0], [1], [0, 0, 1, 1], [], []>} : vector<16x16xf32>, vector<16x1xf32>, vector<16x1xf32> -> vector<16x1xf32>
    %c0_6 = arith.constant 0 : index
    %c0_7 = arith.constant 0 : index
    %8 = vector.load %arg3[%c0_6, %c0_7] : memref<16x1xf32, #tpu.memory_space<vmem>>, vector<16x1xf32>
    %9 = arith.addf %7, %8 : vector<16x1xf32>
    %10 = arith.negf %9 : vector<16x1xf32>
    %11 = math.exp %10 : vector<16x1xf32>
    %cst_8 = arith.constant 1.000000e+00 : f32
    %12 = vector.broadcast %cst_8 : f32 to vector<16x1xf32>
    %13 = arith.addf %12, %11 : vector<16x1xf32>
    %14 = arith.divf %12, %13 : vector<16x1xf32>
    %15 = vector.broadcast %14 : vector<16x1xf32> to vector<16x256xf32>
    %16 = arith.mulf %1, %15 : vector<16x256xf32>
    %c0_9 = arith.constant 0 : index
    %c0_10 = arith.constant 0 : index
    %c0_11 = arith.constant 0 : index
    %17 = vector.load %arg4[%c0_9, %c0_10, %c0_11] : memref<1x16x256xf32, #tpu.memory_space<vmem>>, vector<1x16x256xf32>
    %18 = vector.shape_cast %17 : vector<1x16x256xf32> to vector<16x256xf32>
    %19 = vector.shape_cast %16 : vector<16x256xf32> to vector<1x16x256xf32>
    tpu.vector_store %arg4[%c0_9, %c0_10, %c0_11], %19 {strides = array<i32>} : memref<1x16x256xf32, #tpu.memory_space<vmem>>, vector<1x16x256xf32>,
    return
  }
  func.func @transform_0(%arg0: i32) -> (i32, i32, i32) {
    %c0_i32 = arith.constant 0 : i32
    %c0_i32_0 = arith.constant 0 : i32
    %c0_i32_1 = arith.constant 0 : i32
    return %arg0, %c0_i32, %c0_i32_0 : i32, i32, i32
  }
  func.func @transform_1(%arg0: i32) -> (i32, i32) {
    %c0_i32 = arith.constant 0 : i32
    %c0_i32_0 = arith.constant 0 : i32
    %c0_i32_1 = arith.constant 0 : i32
    return %c0_i32, %c0_i32_0 : i32, i32
  }
  func.func @transform_2(%arg0: i32) -> (i32, i32) {
    %c0_i32 = arith.constant 0 : i32
    %c0_i32_0 = arith.constant 0 : i32
    %c0_i32_1 = arith.constant 0 : i32
    return %c0_i32, %c0_i32_0 : i32, i32
  }
  func.func @transform_3(%arg0: i32) -> (i32, i32, i32) {
    %c0_i32 = arith.constant 0 : i32
    %c0_i32_0 = arith.constant 0 : i32
    %c0_i32_1 = arith.constant 0 : i32
    return %arg0, %c0_i32, %c0_i32_0 : i32, i32, i32
  }
}

</mosaic_0001>

<bundles_post_ra>
// kernel: tpu_custom_call.1
= control target key start
LH: loop header
LB: loop body
LE: loop exit
PB: predicated region body
PF: predicated region fallthrough
CT: control target
= control target key end

     0   :  { %8 = vsyncpa [#allocation3], 0  ;;  %s803_s0 = inlined_call_operand.hbm [shape: f32[2,16,256], index: 0, kind: input, shape index: {}]   ;;  %s804_s1 = inlined_call_operand.vmem [shape: f32[16,16], index: 1, kind: input, shape index: {}]   ;;  %s805_s2 = inlined_call_operand.vmem [shape: f32[16,1], index: 2, kind: input, shape index: {}]   ;;  %s806_s3 = inlined_call_operand.hbm [shape: f32[2,16,256], index: 3, kind: output, shape index: {}]  }
   0x1   :  { %10 = vsyncpa [#allocation3 + $0x1], 0 }
   0x2   :  { %11 = vsyncpa [#allocation4], 0 }
   0x3   :  { %13 = vsyncpa [#allocation4 + $0x1], 0  ;;  %s625_s12 = smov 0   ;;  %s627_s13 = smov 0  }
   0x4   :  { %s629_s14 = smov 0   ;;  %s631_s15 = smov 0  }
   0x5 LB: > { %s646_s16 = sadd.s32 4294967295, %s596_s15   ;;  %s404_s17 = sadd.s32 4294967294, %s596_s15   ;;  %s596_s15 = sphi %s631_s15, %s819_s15   ;;  %s592_s14 = sphi %s629_s14, %s818_s14   ;;  %s588_s13 = sphi %s627_s13, %s817_s13   ;;  %s584_s12 = sphi %s625_s12, %s816_s12  }
   0x6   : > { %s650_s18 = sadd.s32 1, %s596_s15   ;;  %s26_s19 = sadd.s32 1, %s592_s14 }
   0x7   : > { %s23_s20 = ssub.s32 %s596_s15, %s650_s18  ;;  %p33_p0 = scmp.ne.s32.totalorder %s592_s14, %s588_s13 }
   0x8   : > { %p24_p1 = scmp.eq.s32.totalorder %s23_s20, 0  ;;  %p34_p2 = scmp.eq.s32.totalorder %s596_s15, 0 }
   0x9   : > { %p39_p3 = scmp.ne.s32.totalorder %s588_s13, %s584_s12  ;;  %p40_p4 = scmp.eq.s32.totalorder %s646_s16, 0 }
   0xa   : > { %s662_s21 = scalar_select %p24_p1, %s592_s14, %s26_s19  }
   0xb   : > { %p664_p5 = por %p34_p2, %p33_p0  ;;  %p668_p6 = por %p40_p4, %p39_p3 }
   0xc   : > { %p105_p7 = scmp.eq.s32.totalorder %s646_s16, 1  ;;  %p111_p8 = scmp.eq.s32.totalorder %s404_s17, 1 }
   0xd   : > { %p451_p10 = scmp.lt.s32.totalorder %s596_s15, 2  ;;  %s137_s26 = sand.u32 1, %s592_s14  }
   0xe   : > { %p675_p11 = por %p105_p7, %p33_p0  ;;  %p679_p12 = por %p111_p8, %p39_p3 }
   0xf   : > { %s422_s27 = sshll.u32 %s596_s15, 9  ;;  %s407_s28 = sshll.u32 %s137_s26, 5 }
  0x10   : > { %s810_s24 = scalar_select %p675_p11, 1, 0 }
  0x11   : > { %s811_s25 = scalar_select %p679_p12, 1, 0 }
  0x12   : > { %s688_s4 = scalar_lea.hbm %s803_s0, %s422_s27  ;;  %s141_s5 = scalar_lea.vmem [#allocation2], %s407_s28 }
  0x13   : > { %s148_s6 = sshll.u32 %s141_s5, 4  ;;  %p692_p13 = pnand %p451_p10, %p664_p5  ;;  %s696_s6 = int_to_ptr.vmem [resolvable:$true] %s148_s6 }
  0x14   : > { %s698_s8 = scalar_lea.sflag [#allocation3], %s137_s26  ;;  %s500_s9 = scalar_lea.hbm %s688_s4, 512 }
  0x15   : > { %p501_p0 = scmp.ne.s32.totalorder %s688_s4, %s500_s9  ;;  %p502_p1 = pneg %p692_p13 }
  0x16   : > { %s505_s17 = scalar_lea.hbm %s803_s0, 1024  ;;  %p506_p4 = scmp.lt.u32.totalorder %s688_s4, %s803_s0 }
  0x17   : > { %p503_p2 = pnand %p502_p1, %p501_p0  ;;  %p507_p5 = scmp.lt.u32.totalorder %s505_s17, %s500_s9 }
  0x18   : > { %p509_p8 = scmp.lt.u32.totalorder %s500_s9, %s688_s4 }
  0x19   : > { %p504_p3 = pneg %p503_p2  ;;  %p508_p7 = por %p507_p5, %p506_p4 }
  0x1b   : > { %p510_p10 = por %p509_p8, %p508_p7 }
  0x1d   : > { %p511_p9 = pnand %p510_p10, %p504_p3 }
  0x1f   : > { %514 = shalt.err (!%p511_p9)
}
  0x20   : > { %s515_s22 = scalar_lea.vmem %s696_s6, 512  ;;  %s598_s26 = smov [#allocation2]  }
  0x21   : > { %p516_p0 = scmp.ne.s32.totalorder %s696_s6, %s515_s22  ;;  %s520_s27 = sshll.u32 %s598_s26, 4  ;;  %s521_s27 = int_to_ptr.vmem [resolvable:$false] %s520_s27 }
  0x22   : > { %s522_s28 = scalar_lea.vmem %s521_s27, 1024  ;;  %p523_p11 = scmp.lt.s32.totalorder %s696_s6, %s521_s27 }
  0x23   : > { %p518_p2 = pnand %p516_p0, %p502_p1  ;;  %p524_p4 = scmp.lt.s32.totalorder %s522_s28, %s515_s22 }
  0x25   : > { %p519_p12 = pneg %p518_p2  ;;  %p525_p5 = por %p524_p4, %p523_p11 }
  0x27   : > { %p526_p7 = pnand %p525_p5, %p519_p12 }
  0x29   : > { %529 = shalt.err (!%p526_p7)
}
  0x2a   : > { %s599_s29 = smov 256   ;;  %s600_s30 = smov 16  }
  0x2b   : > { %446 = dma.hbm_to_vmem [thread:$0]  (!%p692_p13), %s688_s4, 512, %s696_s6, %s698_s8, %s599_s29, %s599_s29, %s600_s30  }
  0x2c   : > { %p410_p9 = scmp.ge.s32.totalorder %s596_s15, 1  ;;  %p156_p1 = scmp.lt.s32.totalorder %s596_s15, 3 }
  0x2e   : > { %p157_p3 = pnand %p410_p9, %p156_p1 }
  0x2f   : > { %s729_s5 = sand.u32 (!%p157_p3), 1, %s588_s13  }
  0x30   : > { %160 = sbr.rel (%p157_p3) target bundleno = 603 (0x25b), region = 32  ;;  %s411_s9 = sshll.u32 (!%p157_p3), %s729_s5, 5 }
  0x31   : > { %s163_s10 = scalar_lea.sflag (!%p157_p3), [#allocation3], %s729_s5  ;;  %s166_s11 = scalar_lea.vmem (!%p157_p3), [#allocation2], %s411_s9 }
  0x37   : > { %575 = dma.done.wait (%p668_p6), %s163_s10, 512  }
  0x38   : > { %577 = vsyncadd (%p668_p6), %s163_s10, 4294966784  ;;  %v189_v0 = vld [vmem:[%s166_s11] sm:$0xff]  ;;  %v190_v1 = vld [vmem:[%s166_s11 + $0x8] sm:$0xff]  ;;  %vm205_vm0 = vcmask 130048   ;;  %v601_v13 = vmov 0   ;;  %s188_s22 = scalar_lea.vmem [#allocation5], %s411_s9 }
  0x39   : > { %v191_v2 = vld [vmem:[%s166_s11 + $0x10] sm:$0xff]  ;;  %v193_v3 = vadd.f32 %v190_v1, %v189_v0  ;;  %v192_v4 = vld [vmem:[%s166_s11 + $0x18] sm:$0xff]  ;;  %v201_v6 = vld [vmem:[%s804_s1] sm:$0xff]  ;;  %490 = vset.pattern.permute.xlu1 %v601_v13  ;;  %491 = vset.pattern.permute.xlu0 %v601_v13  ;;  %s331_s26 = sshll.u32 %s188_s22, 4  ;;  %s423_s27 = sshll.u32 %s646_s16, 9  ;;  %s754_s26 = int_to_ptr.vmem [resolvable:$true] %s331_s26 }
  0x3a   : > { %v196_v5 = vadd.f32 %v192_v4, %v191_v2  ;;  %432 = vmatprep.mubr.msk.f32.mxu0 %vm205_vm0, %v201_v6  ;;  %v202_v12 = vld [vmem:[%s804_s1 + $0x8] sm:$0xff]  ;;  %v203_v15 = vld [vmem:[%s805_s2] sm:$0xff]  ;;  %s759_s30 = scalar_lea.hbm %s806_s3, %s423_s27  ;;  %s318_s9 = scalar_lea.sflag [#allocation4], %s729_s5 }
  0x3b   : > { %194 = vadd.xlane.f32.xlu0 %v193_v3  ;;  %v204_v14 = vld [vmem:[%s805_s2 + $0x8] sm:$0xff]  ;;  %s530_s10 = scalar_lea.vmem %s754_s26, 512  ;;  %p813_p11 = scmp.ne.s32.totalorder %s810_s24, 0 }
  0x3c   : > { %p531_p6 = scmp.ne.s32.totalorder %s754_s26, %s530_s10  ;;  %s602_s16 = smov [#allocation5]  }
  0x3d   : > { %s534_s11 = sshll.u32 %s602_s16, 4  ;;  %s535_s11 = int_to_ptr.vmem [resolvable:$false] %s534_s11 }
  0x3e   : > { %p532_p12 = pnand %p531_p6, %p813_p11  ;;  %s536_s4 = scalar_lea.vmem %s535_s11, 1024 }
  0x3f   : > { %197 = vadd.xlane.f32.xlu0 %v196_v5  ;;  %p537_p8 = scmp.lt.s32.totalorder %s754_s26, %s535_s11  ;;  %p538_p10 = scmp.lt.s32.totalorder %s536_s4, %s530_s10 }
  0x40   : > { %p533_p13 = pneg %p532_p12 }
  0x41   : > { %p539_p0 = por %p538_p10, %p537_p8 }
  0x43   : > { %p540_p2 = pnand %p539_p0, %p533_p13 }
  0xc8   : > { %v195_v7 = vpop.xlane.xlu0 %194 }
  0xc9   : > { %v199_v9 = vmul.f32 0.00390625, %v195_v7 }
  0xcc   : > { %v198_v8 = vpop.xlane.xlu0 %197 }
  0xcd   : > { %v200_v10 = vmul.f32 0.00390625, %v198_v8 }
  0xcf   : > { %v435_v11 = vpack.c.bf16 %v200_v10, %v199_v9 }
  0xd1   : > { %436 = vmatprep.subr.bf16.mxu0 %v435_v11 }
  0xd2   : > { %438 = vmatpush3.bf16.msra.mxu0 %v435_v11 }
  0xd5   : > { %433 = vmatmul.mubr.msk.f32.vlgmr.msra.gmra.mrb[0].mxu0 %vm205_vm0, %v202_v12 }
 0x1a8   : > { %v434_v16 = vpop.f32.mrb[0].mxu0 }
 0x1a9   : > { %v284_v17 = vadd.f32 %v434_v16, %v204_v14  ;;  %v278_v18 = vpop.f32.mrb[1].mxu0 }
 0x1aa   : > { %v279_v19 = vadd.f32 %v278_v18, %v203_v15 }
 0x1ab   : > { %v416_v20 = vmul.f32 -1.442695, %v284_v17 }
 0x1ac   : > { %v415_v21 = vmul.f32 -1.442695, %v279_v19 }
 0x1ad   : > { %492 = vpow2.f32 %v416_v20 }
 0x1ae   : > { %494 = vpow2.f32 %v415_v21 }
 0x1b7   : > { %v493_v22 = vpop.eup %492 }
 0x1b8   : > { %v495_v23 = vpop.eup %494  ;;  %v294_v25 = vadd.f32 1.0, %v493_v22 }
 0x1b9   : > { %v293_v24 = vadd.f32 1.0, %v495_v23 }
 0x1bb   : > { %496 = vrcp.f32 %v293_v24 }
 0x1bc   : > { %498 = vrcp.f32 %v294_v25 }
 0x1c5   : > { %v497_v26 = vpop.eup %496 }
 0x1c6   : > { %301 = vperm.xlu1 %490, %v497_v26   ;;  %v499_v27 = vpop.eup %498 }
 0x1ca   : > { %306 = vperm.xlu1 %490, %v499_v27  }
 0x245   : > { %v302_v28 = vpop.permute.xlu1 %301 }
 0x246   : > { %v309_v29 = vmul.f32 %v302_v28, %v189_v0  ;;  %v310_v30 = vmul.f32 %v302_v28, %v190_v1 }
 0x248   : > { %313 = vst [vmem:[%s188_s22] sm:$0xff] %v309_v29  ;;  %314 = vst [vmem:[%s188_s22 + $0x8] sm:$0xff] %v310_v30 }
 0x249   : > { %v307_v31 = vpop.permute.xlu1 %306 }
 0x24a   : > { %v311_v32 = vmul.f32 %v307_v31, %v191_v2  ;;  %v312_v33 = vmul.f32 %v307_v31, %v192_v4 }
 0x24c   : > { %315 = vst [vmem:[%s188_s22 + $0x10] sm:$0xff] %v311_v32  ;;  %316 = vst [vmem:[%s188_s22 + $0x18] sm:$0xff] %v312_v33 }
 0x24d   : > { %543 = shalt.err (!%p540_p2)
}
 0x24e   : > { %s544_s6 = scalar_lea.hbm %s759_s30, 512  ;;  %s548_s8 = scalar_lea.hbm %s806_s3, 1024 }
 0x24f   : > { %p545_p4 = scmp.ne.s32.totalorder %s759_s30, %s544_s6  ;;  %p549_p9 = scmp.lt.u32.totalorder %s759_s30, %s806_s3 }
 0x250   : > { %p550_p1 = scmp.lt.u32.totalorder %s548_s8, %s544_s6  ;;  %p552_p6 = scmp.lt.u32.totalorder %s544_s6, %s759_s30 }
 0x251   : > { %p546_p5 = pnand %p545_p4, %p813_p11 }
 0x252   : > { %p551_p3 = por %p550_p1, %p549_p9 }
 0x253   : > { %p547_p7 = pneg %p546_p5 }
 0x254   : > { %p553_p12 = por %p552_p6, %p551_p3 }
 0x256   : > { %p554_p13 = pnand %p553_p12, %p547_p7 }
 0x258   : > { %557 = shalt.err (!%p554_p13)
}
 0x259   : > { %s603_s20 = smov 256   ;;  %s604_s22 = smov 16  }
 0x25a   : > { %441 = dma.vmem_to_hbm [thread:$0]  (%p813_p11), %s754_s26, 512, %s759_s30, %s318_s9, %s603_s20, %s603_s20, %s604_s22  }
 0x25b PF: > { %s346_s27 = sand.u32 1, %s584_s12   ;;  %p814_p8 = scmp.ne.s32.totalorder %s811_s25, 0 }
 0x25c   : > { %p815_p10 = scmp.ge.s32.totalorder %s596_s15, 2  ;;  %s347_s28 = scalar_lea.sflag [#allocation4], %s346_s27 }
 0x25e   : > { %p448_p0 = pnand %p815_p10, %p814_p8 }
 0x260   : > { %579 = dma.done.wait (!%p448_p0), %s347_s28, 512  }
 0x261   : > { %581 = vsyncadd (!%p448_p0), %s347_s28, 4294966784  ;;  %p16_p2 = scmp.ge.s32.totalorder %s650_s18, 4   ;;  %s816_s12 = smov %s588_s13 }
 0x262   : > { %s817_s13 = smov %s592_s14  ;;  %s818_s14 = smov %s662_s21 }
 0x263   : > { %s819_s15 = smov %s650_s18  ;;  %18 = sbr.rel (!%p16_p2) target bundleno = 5 (0x5), region = 77 }
 0x26a   :  { %352 = vsyncpa [#allocation3], 1 }
 0x26b   :  { %354 = vsyncpa [#allocation3 + $0x1], 1 }
 0x26c   :  { %355 = vsyncpa [#allocation4], 1 }
 0x26d   :  { %357 = vsyncpa [#allocation4 + $0x1], 1 }

</bundles_post_ra>
